<compile_context>
chip_gen: v6e
topology: v6e:2x2x1
jax: 0.10.0
libtpu: 0.0.40
codegen_flags: <defaults>
</compile_context>

<pallas_src>
import jax
import jax.numpy as jnp
from jax.experimental import pallas as pl
from jax.experimental.pallas import tpu as pltpu

LANE = 128
SUBLANE = 8
H1, H2 = 128, 64


def _round_up(n, m):
    return (n + m - 1) // m * m


def dqn_kernel(x_ref, w1_ref, b1_ref, w2_ref, b2_ref, w3_ref, b3_ref, o_ref):
    # x arrives as f32 straight from HBM; cast to bf16 here (no extra wrapper
    # pass over x).  Weights are already (in, out) bf16, biases f32.
    x = x_ref[...].astype(jnp.bfloat16)                      # (tb, in_f)

    h1 = jnp.dot(x, w1_ref[...], preferred_element_type=jnp.float32)
    h1 = jnp.maximum(h1 + b1_ref[...], 0.0).astype(jnp.bfloat16)

    h2 = jnp.dot(h1, w2_ref[...], preferred_element_type=jnp.float32)
    h2 = jnp.maximum(h2 + b2_ref[...], 0.0).astype(jnp.bfloat16)

    out = jnp.dot(h2, w3_ref[...], preferred_element_type=jnp.float32)
    o_ref[...] = (out + b3_ref[...]).astype(o_ref.dtype)     # bf16 writeback


def init_dqn_params(key, input_shape, num_actions):
    """PyTorch-style Linear init: W (out, in), b (1, out), all f32."""
    ks = jax.random.split(key, 6)
    dims = [(H1, input_shape), (H2, H1), (num_actions, H2)]
    params = []
    for i, (out_f, in_f) in enumerate(dims):
        bound = float(in_f) ** -0.5
        w = jax.random.uniform(ks[2 * i], (out_f, in_f), jnp.float32,
                               minval=-bound, maxval=bound)
        b = jax.random.uniform(ks[2 * i + 1], (1, out_f), jnp.float32,
                               minval=-bound, maxval=bound)
        params += [w, b]
    return tuple(params)


def pack_params(raw_params, num_actions):
    """One-time host-side prep: transpose weights to MXU-native (in, out),
    cast them to bf16, and lane-pad the final layer to 128 outputs so the
    kernel's output block is lane-dense (no masked vst)."""
    w1, b1, w2, b2, w3, b3 = raw_params
    n_pad = _round_up(max(num_actions, LANE), LANE)
    w3p = jnp.zeros((n_pad, w3.shape[1]), jnp.float32).at[:num_actions].set(w3)
    b3p = jnp.zeros((1, n_pad), jnp.float32).at[:, :num_actions].set(b3)
    return (w1.T.astype(jnp.bfloat16), b1,        # (in_f, 128) bf16, (1, 128) f32
            w2.T.astype(jnp.bfloat16), b2,        # (128, 64)  bf16, (1, 64)  f32
            w3p.T.astype(jnp.bfloat16), b3p)      # (64, 128)  bf16, (1, 128) f32


def _pick_tile_b(B, tile_b):
    if B <= SUBLANE:
        # Single block covering the whole (tiny) batch; block == full array
        # dims is always a legal TPU block shape.
        return B
    # >=2 grid steps so the "parallel" batch axis can shard across v7x's two
    # TensorCores; sublane-aligned; capped at tile_b (per-step VMEM stays a
    # few MiB, and large tiles amortize the ~0.35 us per-step overhead).
    half = _round_up(pl.cdiv(B, 2), SUBLANE)
    return max(SUBLANE, min(tile_b, half))


def dqn_forward(x, packed_params, num_actions, tile_b=2048):
    """Fused 3-layer MLP forward. x: (B, input_shape) f32 -> (B, num_actions) f32."""
    w1, b1, w2, b2, w3p, b3p = packed_params
    B, in_f = x.shape
    n_pad = w3p.shape[1]

    tb = _pick_tile_b(B, tile_b)
    grid = (pl.cdiv(B, tb),)

    def const_spec(a):
        # Constant block index -> weights/biases stay VMEM-resident across grid.
        return pl.BlockSpec(a.shape, lambda i: (0,) * a.ndim)

    flops = 2 * B * (in_f * H1 + H1 * H2 + H2 * n_pad)
    bytes_accessed = int(
        x.size * x.dtype.itemsize
        + sum(int(p.size) * p.dtype.itemsize for p in packed_params)
        + B * n_pad * 2)  # bf16 output

    out = pl.pallas_call(
        dqn_kernel,
        out_shape=jax.ShapeDtypeStruct((B, n_pad), jnp.bfloat16),
        grid=grid,
        in_specs=[pl.BlockSpec((tb, in_f), lambda i: (i, 0)),
                  const_spec(w1), const_spec(b1),
                  const_spec(w2), const_spec(b2),
                  const_spec(w3p), const_spec(b3p)],
        out_specs=pl.BlockSpec((tb, n_pad), lambda i: (i, 0)),
        compiler_params=pltpu.CompilerParams(
            dimension_semantics=("parallel",)),
        cost_estimate=pl.CostEstimate(flops=flops, transcendentals=0,
                                      bytes_accessed=bytes_accessed),
    )(x, w1, b1, w2, b2, w3p, b3p)

    # Padded lanes (>= num_actions) are zero-weight columns; ragged batch rows
    # (if any) were never written back by Pallas. Slice and upcast.
    return out[:, :num_actions].astype(jnp.float32)


def dqn_reference(x, packed_params, num_actions):
    """Pure-JAX reference using the same bf16/f32 numerics as the kernel."""
    w1, b1, w2, b2, w3p, b3p = packed_params
    h = jnp.dot(x.astype(jnp.bfloat16), w1, preferred_element_type=jnp.float32)
    h = jnp.maximum(h + b1, 0.0).astype(jnp.bfloat16)
    h = jnp.dot(h, w2, preferred_element_type=jnp.float32)
    h = jnp.maximum(h + b2, 0.0).astype(jnp.bfloat16)
    out = jnp.dot(h, w3p, preferred_element_type=jnp.float32) + b3p
    return out.astype(jnp.bfloat16)[:, :num_actions].astype(jnp.float32)


if __name__ == "__main__":
    key = jax.random.PRNGKey(0)
    k_x, k_p = jax.random.split(key)

    batch = 8
    input_shape = 32
    num_actions = 4

    x = jax.random.normal(k_x, (batch, input_shape), jnp.float32)
    raw = init_dqn_params(k_p, input_shape, num_actions)
    packed = pack_params(raw, num_actions)

    out = dqn_forward(x, packed, num_actions)
    out = jax.block_until_ready(out)

    ref = dqn_reference(x, packed, num_actions)
    assert out.shape == (batch, num_actions)
    # Q-values are written back as bf16, so compare at bf16 granularity.
    assert jnp.allclose(out, ref, atol=2e-2, rtol=2e-2), "mismatch vs reference"

    print("KERNEL_OK")
</pallas_src>

<mosaic_0001>
module attributes {stable_mosaic.version = 11 : i64} {
  func.func @dqn_kernel(%arg0: i32, %arg1: memref<8x32xf32, #tpu.memory_space<vmem>>, %arg2: memref<32x128xbf16, #tpu.memory_space<vmem>>, %arg3: memref<1x128xf32, #tpu.memory_space<vmem>>, %arg4: memref<128x64xbf16, #tpu.memory_space<vmem>>, %arg5: memref<1x64xf32, #tpu.memory_space<vmem>>, %arg6: memref<64x128xbf16, #tpu.memory_space<vmem>>, %arg7: memref<1x128xf32, #tpu.memory_space<vmem>>, %arg8: memref<8x128xbf16, #tpu.memory_space<vmem>>) attributes {dimension_semantics = [#tpu.dimension_semantics<parallel>], iteration_bounds = array<i64: 1>, scalar_prefetch = 0 : i64, scratch_operands = 0 : i64, tpu.core_type = #tpu.core_type<tc>, window_params = [{transform_indices = @transform_0, window_bounds = array<i64: 8, 32>}, {pipeline_mode = #tpu.pipeline_mode<synchronous>, transform_indices = @transform_1, window_bounds = array<i64: 32, 128>}, {pipeline_mode = #tpu.pipeline_mode<synchronous>, transform_indices = @transform_2, window_bounds = array<i64: 1, 128>}, {pipeline_mode = #tpu.pipeline_mode<synchronous>, transform_indices = @transform_3, window_bounds = array<i64: 128, 64>}, {pipeline_mode = #tpu.pipeline_mode<synchronous>, transform_indices = @transform_4, window_bounds = array<i64: 1, 64>}, {pipeline_mode = #tpu.pipeline_mode<synchronous>, transform_indices = @transform_5, window_bounds = array<i64: 64, 128>}, {pipeline_mode = #tpu.pipeline_mode<synchronous>, transform_indices = @transform_6, window_bounds = array<i64: 1, 128>}, {transform_indices = @transform_7, window_bounds = array<i64: 8, 128>}]} {
    %c0 = arith.constant 0 : index
    %c0_0 = arith.constant 0 : index
    %0 = vector.load %arg1[%c0, %c0_0] : memref<8x32xf32, #tpu.memory_space<vmem>>, vector<8x32xf32>
    %1 = arith.truncf %0 : vector<8x32xf32> to vector<8x32xbf16>
    %c0_1 = arith.constant 0 : index
    %c0_2 = arith.constant 0 : index
    %2 = vector.load %arg2[%c0_1, %c0_2] : memref<32x128xbf16, #tpu.memory_space<vmem>>, vector<32x128xbf16>
    %cst = arith.constant dense<0.000000e+00> : vector<8x128xf32>
    %3 = tpu.matmul %1, %2, %cst {dimension_numbers = #tpu.dot_dimension_numbers<[1], [0], [0], [1], [0, 0, 1, 1], [], []>} : vector<8x32xbf16>, vector<32x128xbf16>, vector<8x128xf32> -> vector<8x128xf32>
    %c0_3 = arith.constant 0 : index
    %c0_4 = arith.constant 0 : index
    %4 = vector.load %arg3[%c0_3, %c0_4] : memref<1x128xf32, #tpu.memory_space<vmem>>, vector<1x128xf32>
    %5 = vector.broadcast %4 : vector<1x128xf32> to vector<8x128xf32>
    %6 = arith.addf %3, %5 : vector<8x128xf32>
    %cst_5 = arith.constant 0.000000e+00 : f32
    %7 = vector.broadcast %cst_5 : f32 to vector<8x128xf32>
    %8 = arith.maximumf %6, %7 : vector<8x128xf32>
    %9 = arith.truncf %8 : vector<8x128xf32> to vector<8x128xbf16>
    %c0_6 = arith.constant 0 : index
    %c0_7 = arith.constant 0 : index
    %10 = vector.load %arg4[%c0_6, %c0_7] : memref<128x64xbf16, #tpu.memory_space<vmem>>, vector<128x64xbf16>
    %cst_8 = arith.constant dense<0.000000e+00> : vector<8x64xf32>
    %11 = tpu.matmul %9, %10, %cst_8 {dimension_numbers = #tpu.dot_dimension_numbers<[1], [0], [0], [1], [0, 0, 1, 1], [], []>} : vector<8x128xbf16>, vector<128x64xbf16>, vector<8x64xf32> -> vector<8x64xf32>
    %c0_9 = arith.constant 0 : index
    %c0_10 = arith.constant 0 : index
    %12 = vector.load %arg5[%c0_9, %c0_10] : memref<1x64xf32, #tpu.memory_space<vmem>>, vector<1x64xf32>
    %13 = vector.broadcast %12 : vector<1x64xf32> to vector<8x64xf32>
    %14 = arith.addf %11, %13 : vector<8x64xf32>
    %cst_11 = arith.constant 0.000000e+00 : f32
    %15 = vector.broadcast %cst_11 : f32 to vector<8x64xf32>
    %16 = arith.maximumf %14, %15 : vector<8x64xf32>
    %17 = arith.truncf %16 : vector<8x64xf32> to vector<8x64xbf16>
    %c0_12 = arith.constant 0 : index
    %c0_13 = arith.constant 0 : index
    %18 = vector.load %arg6[%c0_12, %c0_13] : memref<64x128xbf16, #tpu.memory_space<vmem>>, vector<64x128xbf16>
    %cst_14 = arith.constant dense<0.000000e+00> : vector<8x128xf32>
    %19 = tpu.matmul %17, %18, %cst_14 {dimension_numbers = #tpu.dot_dimension_numbers<[1], [0], [0], [1], [0, 0, 1, 1], [], []>} : vector<8x64xbf16>, vector<64x128xbf16>, vector<8x128xf32> -> vector<8x128xf32>
    %c0_15 = arith.constant 0 : index
    %c0_16 = arith.constant 0 : index
    %20 = vector.load %arg7[%c0_15, %c0_16] : memref<1x128xf32, #tpu.memory_space<vmem>>, vector<1x128xf32>
    %21 = vector.broadcast %20 : vector<1x128xf32> to vector<8x128xf32>
    %22 = arith.addf %19, %21 : vector<8x128xf32>
    %23 = arith.truncf %22 : vector<8x128xf32> to vector<8x128xbf16>
    %c0_17 = arith.constant 0 : index
    %c0_18 = arith.constant 0 : index
    %24 = vector.load %arg8[%c0_17, %c0_18] : memref<8x128xbf16, #tpu.memory_space<vmem>>, vector<8x128xbf16>
    tpu.vector_store %arg8[%c0_17, %c0_18], %23 {strides = array<i32>} : memref<8x128xbf16, #tpu.memory_space<vmem>>, vector<8x128xbf16>,
    return
  }
  func.func @transform_0(%arg0: i32) -> (i32, i32) {
    %c0_i32 = arith.constant 0 : i32
    %c0_i32_0 = arith.constant 0 : i32
    return %arg0, %c0_i32 : i32, i32
  }
  func.func @transform_1(%arg0: i32) -> (i32, i32) {
    %c0_i32 = arith.constant 0 : i32
    %c0_i32_0 = arith.constant 0 : i32
    %c0_i32_1 = arith.constant 0 : i32
    return %c0_i32, %c0_i32_0 : i32, i32
  }
  func.func @transform_2(%arg0: i32) -> (i32, i32) {
    %c0_i32 = arith.constant 0 : i32
    %c0_i32_0 = arith.constant 0 : i32
    %c0_i32_1 = arith.constant 0 : i32
    return %c0_i32, %c0_i32_0 : i32, i32
  }
  func.func @transform_3(%arg0: i32) -> (i32, i32) {
    %c0_i32 = arith.constant 0 : i32
    %c0_i32_0 = arith.constant 0 : i32
    %c0_i32_1 = arith.constant 0 : i32
    return %c0_i32, %c0_i32_0 : i32, i32
  }
  func.func @transform_4(%arg0: i32) -> (i32, i32) {
    %c0_i32 = arith.constant 0 : i32
    %c0_i32_0 = arith.constant 0 : i32
    %c0_i32_1 = arith.constant 0 : i32
    return %c0_i32, %c0_i32_0 : i32, i32
  }
  func.func @transform_5(%arg0: i32) -> (i32, i32) {
    %c0_i32 = arith.constant 0 : i32
    %c0_i32_0 = arith.constant 0 : i32
    %c0_i32_1 = arith.constant 0 : i32
    return %c0_i32, %c0_i32_0 : i32, i32
  }
  func.func @transform_6(%arg0: i32) -> (i32, i32) {
    %c0_i32 = arith.constant 0 : i32
    %c0_i32_0 = arith.constant 0 : i32
    %c0_i32_1 = arith.constant 0 : i32
    return %c0_i32, %c0_i32_0 : i32, i32
  }
  func.func @transform_7(%arg0: i32) -> (i32, i32) {
    %c0_i32 = arith.constant 0 : i32
    %c0_i32_0 = arith.constant 0 : i32
    return %arg0, %c0_i32 : i32, i32
  }
}

</mosaic_0001>

<bundles_post_ra>
// kernel: tpu_custom_call.1
= control target key start
LH: loop header
LB: loop body
LE: loop exit
PB: predicated region body
PF: predicated region fallthrough
CT: control target
= control target key end

     0   :  { %v426_v1 = vmov 0.0   ;;  %vm427_vm0 = vmmov 0   ;;  %vm53_vm1 = vcmask 261120   ;;  %s529_s0 = inlined_call_operand.vmem [shape: f32[8,32], index: 0, kind: input, shape index: {}]   ;;  %s530_s1 = inlined_call_operand.vmem [shape: bf16[32,128], index: 1, kind: input, shape index: {}]   ;;  %s531_s2 = inlined_call_operand.vmem [shape: f32[1,128], index: 2, kind: input, shape index: {}]   ;;  %s532_s3 = inlined_call_operand.vmem [shape: bf16[128,64], index: 3, kind: input, shape index: {}]   ;;  %s533_s4 = inlined_call_operand.vmem [shape: f32[1,64], index: 4, kind: input, shape index: {}]   ;;  %s534_s5 = inlined_call_operand.vmem [shape: bf16[64,128], index: 5, kind: input, shape index: {}]   ;;  %s535_s6 = inlined_call_operand.vmem [shape: f32[1,128], index: 6, kind: input, shape index: {}]   ;;  %s536_s7 = inlined_call_operand.hbm [shape: bf16[8,128], index: 7, kind: output, shape index: {}]  }
   0x1   :  { %v390_v0 = vld [vmem:[%s530_s1 + $0x8] sm:$0xff]   ;;  %347 = vmatprep.subr.bf16.mxu0 %v426_v1  ;;  %v391_v2 = vld [vmem:[%s530_s1] sm:$0xff]   ;;  %355 = vmatprep.subr.bf16.mxu1 %v426_v1  ;;  %v392_v4 = vld [vmem:[%s532_s3 + $0x38] sm:$0xff]  }
   0x2   :  { %348 = vmatpush3.bf16.msra.mxu0 %v390_v0  ;;  %351 = vmatprep.mubr.msk.bf16.mxu0 %vm427_vm0, %v426_v1  ;;  %v28_v3 = vld [vmem:[%s529_s0] sm:$0xff]  ;;  %v393_v6 = vld [vmem:[%s532_s3 + $0x30] sm:$0xff]   ;;  %v394_v7 = vld [vmem:[%s532_s3 + $0x28] sm:$0xff]  }
   0x3   :  { %349 = vmatprep.subr.bf16.mxu0 %v426_v1  ;;  %371 = vmatprep.mubr.msk.bf16.mxu1 %vm427_vm0, %v426_v1  ;;  %v29_v5 = vpack.c.bf16 %v28_v3, %v28_v3 }
   0x4   :  { %356 = vmatpush3.bf16.msra.mxu1 %v392_v4 }
   0x5   :  { %357 = vmatprep.subr.bf16.mxu1 %v426_v1 }
   0x6   :  { %350 = vmatpush3.bf16.msra.mxu0 %v391_v2 }
   0x7   :  { %375 = vmatprep.subr.bf16.mxu0 %v426_v1 }
   0x8   :  { %358 = vmatpush3.bf16.msra.mxu1 %v393_v6 }
   0x9   :  { %352 = vmatmul.mubr.msk.bf16.vlgmr.msra.gmra.mxu0 %vm53_vm1, %v29_v5  ;;  %359 = vmatprep.subr.bf16.mxu1 %v426_v1 }
   0xa   :  { %383 = vmatprep.mubr.msk.bf16.mxu0 %vm427_vm0, %v426_v1 }
   0xb   :  { %12 = vsyncpa [#allocation3], 0  ;;  %v395_v8 = vld [vmem:[%s532_s3 + $0x20] sm:$0xff]   ;;  %v396_v9 = vld [vmem:[%s532_s3 + $0x18] sm:$0xff]   ;;  %vm251_vm2 = vcmask 523264  }
   0xc   :  { %360 = vmatpush3.bf16.msra.mxu1 %v394_v7  ;;  %v397_v10 = vld [vmem:[%s532_s3 + $0x10] sm:$0xff]   ;;  %v398_v11 = vld [vmem:[%s532_s3 + $0x8] sm:$0xff]   ;;  %v399_v12 = vld [vmem:[%s532_s3] sm:$0xff]  }
   0xd   :  { %361 = vmatprep.subr.bf16.mxu1 %v426_v1  ;;  %v400_v13 = vld [vmem:[%s534_s5 + $0x18] sm:$0xff]   ;;  %v401_v14 = vld [vmem:[%s534_s5 + $0x10] sm:$0xff]   ;;  %v311_v15 = vld [vmem:[%s531_s2] ss:$0 sm:$0xff] }
   0xe   :  { %376 = vmatpush3.bf16.msra.mxu0 %v400_v13  ;;  %v402_v23 = vld [vmem:[%s534_s5 + $0x8] sm:$0xff]   ;;  %v403_v24 = vld [vmem:[%s534_s5] sm:$0xff]   ;;  %s428_s5 = smov [#allocation2]  }
   0xf   :  { %377 = vmatprep.subr.bf16.mxu0 %v426_v1  ;;  %v315_v25 = vld [vmem:[%s533_s4] ss:$0 sm:$0xff]  ;;  %s303_s1 = sshll.u32 %s428_s5, 4  ;;  %s304_s1 = int_to_ptr.vmem [resolvable:$true] %s303_s1 }
  0x10   :  { %362 = vmatpush3.bf16.msra.mxu1 %v395_v8  ;;  %v324_v33 = vld [vmem:[%s535_s6] ss:$0 sm:$0xff]  ;;  %s404_s4 = scalar_lea.vmem %s304_s1, 64  ;;  %p409_p1 = scmp.lt.s32.totalorder %s304_s1, %s304_s1 }
  0x11   :  { %363 = vmatprep.subr.bf16.mxu1 %v426_v1  ;;  %p405_p0 = scmp.ne.s32.totalorder %s304_s1, %s404_s4  ;;  %p410_p2 = scmp.lt.s32.totalorder %s404_s4, %s404_s4 }
  0x12   :  { %378 = vmatpush3.bf16.msra.mxu0 %v401_v14 }
  0x13   :  { %379 = vmatprep.subr.bf16.mxu0 %v426_v1  ;;  %p411_p3 = por %p410_p2, %p409_p1 }
  0x14   :  { %364 = vmatpush3.bf16.msra.mxu1 %v396_v9 }
  0x15   :  { %365 = vmatprep.subr.bf16.mxu1 %v426_v1  ;;  %p412_p4 = pnand %p411_p3, %p405_p0 }
  0x16   :  { %380 = vmatpush3.bf16.msra.mxu0 %v402_v23 }
  0x17   :  { %381 = vmatprep.subr.bf16.mxu0 %v426_v1 }
  0x18   :  { %366 = vmatpush3.bf16.msra.mxu1 %v397_v10 }
  0x19   :  { %367 = vmatprep.subr.bf16.mxu1 %v426_v1 }
  0x1a   :  { %382 = vmatpush3.bf16.msra.mxu0 %v403_v24 }
  0x1c   :  { %368 = vmatpush3.bf16.msra.mxu1 %v398_v11 }
  0x1d   :  { %369 = vmatprep.subr.bf16.mxu1 %v426_v1 }
  0x20   :  { %370 = vmatpush3.bf16.msra.mxu1 %v399_v12 }
  0xc9   :  { %v91_v16 = vpop.f32.mrf.mxu0 }
  0xca   :  { %v92_v17 = vadd.f32 %v311_v15, %v91_v16 }
  0xcb   :  { %v353_v18 = vpop.f32.mrf.mxu0 }
  0xcc   :  { %v97_v19 = vmax.f32 %v92_v17, 0.0 }
  0xcd   :  { %v94_v20 = vpop.f32.mrf.mxu0 }
  0xce   :  { %v98_v21 = vpack.c.bf16 %v97_v19, %v97_v19 }
  0xcf   :  { %v354_v22 = vpop.f32.mrf.mxu0 }
  0xd0   :  { %372 = vmatmul.mubr.bf16.vlgmr.msra.gmra.mxu1 %v98_v21 }
 0x190   :  { %v204_v26 = vpop.f32.mrf.mxu1 }
 0x191   :  { %v205_v27 = vadd.f32 %v315_v25, %v204_v26 }
 0x192   :  { %v373_v28 = vpop.f32.mrf.mxu1 }
 0x193   :  { %v210_v29 = vmax.f32 %v205_v27, 0.0 }
 0x194   :  { %v207_v30 = vpop.f32.mrf.mxu1 }
 0x195   :  { %v211_v31 = vpack.c.bf16 %v210_v29, %v210_v29 }
 0x196   :  { %v374_v32 = vpop.f32.mrf.mxu1 }
 0x197   :  { %384 = vmatmul.mubr.msk.bf16.vlgmr.msra.gmra.mxu0 %vm251_vm2, %v211_v31 }
 0x257   :  { %v289_v34 = vpop.f32.mrf.mxu0 }
 0x258   :  { %v290_v35 = vadd.f32 %v324_v33, %v289_v34 }
 0x259   :  { %v385_v36 = vpop.f32.mrf.mxu0 }
 0x25a   :  { %v295_v37 = vpack.c.bf16 %v290_v35, %v290_v35 }
 0x25b   :  { %v292_v38 = vpop.f32.mrf.mxu0 }
 0x25c   :  { %296 = vst [vmem:[#allocation2] sm:$0xf] %v295_v37 }
 0x25d   :  { %v386_v39 = vpop.f32.mrf.mxu0 }
 0x25e   :  { %415 = shalt.err (!%p412_p4)
}
 0x25f   :  { %306 = dma.vmem_to_hbm [thread:$0]  %s304_s1, 64, %s536_s7, [#allocation3]  }
 0x260   :  { %424 = dma.done.wait [#allocation3], 64  }
 0x261   :  { %425 = vsyncadd [#allocation3], 4294967232 }
 0x262   :  { %310 = vsyncpa [#allocation3], 1 }

</bundles_post_ra>
